<compile_context>
chip_gen: v7x
topology: tpu7x:2x2x1
jax: 0.10.0
libtpu: 0.0.40
codegen_flags: <defaults>
</compile_context>

<pallas_src>
import functools

import jax
import jax.numpy as jnp
from jax.experimental import pallas as pl
from jax.experimental.pallas import tpu as pltpu


# ----------------------------------------------------------------------------
# Kernels
# ----------------------------------------------------------------------------

def _se_mlp(pooled, w1t_ref, b1_ref, w2_ref, b2_ref):
    """SE MLP: pooled (NB, 2C, 1) f32 -> sigmoid weights (NB, 2C, 1) f32.

    Tiny contraction (2C x H, H = 2C // 6): broadcast-mul + sum (VPU/XLU); MXU not worth it.
    """
    h = jnp.sum(w1t_ref[...][None] * pooled, axis=1, keepdims=True) + b1_ref[...][None]
    h = jnp.maximum(h, 0.0)                                                 # (NB, 1, H)
    se = jnp.sum(w2_ref[...][None] * h, axis=2, keepdims=True) + b2_ref[...][None]
    return jax.nn.sigmoid(se)                                               # (NB, 2C, 1)


def _se_fused_kernel(s0_ref, s1_ref, w1t_ref, b1_ref, w2_ref, b2_ref, o_ref):
    """Single-pass fused SE block (concat fused): blocks (NB, C, S) -> (NB, 2C, S)."""
    nb, c, s = s0_ref.shape
    inv_s = jnp.float32(1.0 / s)

    # GlobalAvgPool over the flattened spatial (lane) axis; f32 accumulation; concat fused.
    p0 = jnp.sum(s0_ref[...].astype(jnp.float32), axis=2, keepdims=True) * inv_s   # (NB, C, 1)
    p1 = jnp.sum(s1_ref[...].astype(jnp.float32), axis=2, keepdims=True) * inv_s   # (NB, C, 1)
    se = _se_mlp(jnp.concatenate([p0, p1], axis=1), w1t_ref, b1_ref, w2_ref, b2_ref)

    # Broadcast scale in the I/O dtype; refs are re-read here so cast->mul->cast fuses per
    # vreg instead of holding full f32 slab copies across pooling + scaling.
    se_io = se.astype(s0_ref.dtype)
    o_ref[:, 0:c, :] = (s0_ref[...] * se_io[:, 0:c, :]).astype(o_ref.dtype)
    o_ref[:, c:2 * c, :] = (s1_ref[...] * se_io[:, c:2 * c, :]).astype(o_ref.dtype)


def _se_reduce_kernel(s0_ref, s1_ref, w1t_ref, b1_ref, w2_ref, b2_ref,
                      se_ref, acc_ref, *, true_s):
    """Pass 1 (S-tiled): accumulate pooled sums in f32 scratch, finalize SE weights last tile.

    grid = (N//NB, n_s); s0/s1 blocks: (NB, C, TS); se_ref: (NB, 2C, 1) f32; acc_ref: same.
    The last spatial tile may overhang S; it is masked and the mean uses the true S.
    """
    t = pl.program_id(1)
    n_t = pl.num_programs(1)
    nb, c, ts = s0_ref.shape

    @pl.when(t == 0)
    def _():
        acc_ref[...] = jnp.zeros_like(acc_ref)

    def accumulate(masked):
        x0 = s0_ref[...]
        x1 = s1_ref[...]
        if masked:
            lane = jax.lax.broadcasted_iota(jnp.int32, (1, 1, ts), 2)
            valid = (t * ts + lane) < true_s
            x0 = jnp.where(valid, x0, jnp.zeros((), x0.dtype))
            x1 = jnp.where(valid, x1, jnp.zeros((), x1.dtype))
        acc_ref[:, 0:c, :] += jnp.sum(x0.astype(jnp.float32), axis=2, keepdims=True)
        acc_ref[:, c:2 * c, :] += jnp.sum(x1.astype(jnp.float32), axis=2, keepdims=True)

    if true_s % ts == 0:
        accumulate(False)
    else:
        @pl.when(t < n_t - 1)
        def _():
            accumulate(False)

        @pl.when(t == n_t - 1)
        def _():
            accumulate(True)

    @pl.when(t == n_t - 1)
    def _():
        pooled = acc_ref[...] * jnp.float32(1.0 / true_s)                       # (NB, 2C, 1)
        se_ref[...] = _se_mlp(pooled, w1t_ref, b1_ref, w2_ref, b2_ref)


def _se_scale_kernel(s0_ref, s1_ref, se_ref, o_ref):
    """Pass 2 (S-tiled, fully parallel): out[:, 0:C] = s0 * se0 ; out[:, C:2C] = s1 * se1."""
    c = s0_ref.shape[1]
    se_io = se_ref[...].astype(s0_ref.dtype)                                    # (NB, 2C, 1)
    o_ref[:, 0:c, :] = (s0_ref[...] * se_io[:, 0:c, :]).astype(o_ref.dtype)
    o_ref[:, c:2 * c, :] = (s1_ref[...] * se_io[:, c:2 * c, :]).astype(o_ref.dtype)


# ----------------------------------------------------------------------------
# VMEM budgeting / tiling
# ----------------------------------------------------------------------------

def _vmem_budget():
    """Returns (vmem_limit_bytes to request, data-block budget with ~20% headroom)."""
    try:
        phys = int(pltpu.get_tpu_info().vmem_capacity_bytes)   # 128 MiB v5e/v6e, 64 MiB v7x
    except Exception:
        phys = 64 << 20                                        # conservative (v7x) fallback
    limit = (phys * 3) // 4                                    # ~96 MiB v5e/v6e, ~48 MiB v7x
    budget = (limit * 4) // 5                                  # ~20% headroom inside the limit
    return limit, budget


def _sublane(itemsize):
    """Sublane packing: 8 for f32, 16 for bf16, 32 for int8/fp8."""
    return max(8, 32 // itemsize)


def _rup(x, m):
    return (x + m - 1) // m * m


def _fused_block_bytes(nb, c, s, itemsize):
    """Padded VMEM bytes for one one-pass grid step (double-buffered in/out + f32 tmp)."""
    sub = _sublane(itemsize)
    pad_s = _rup(s, 128)
    in_b = 2 * 2 * nb * _rup(c, sub) * pad_s * itemsize            # 2 inputs, double-buffered
    out_b = 2 * nb * _rup(2 * c, sub) * pad_s * itemsize           # output, double-buffered
    f32_b = 2 * nb * _rup(c, 8) * pad_s * 4 if itemsize < 4 else 0  # pooling upcast intermediates
    return in_b + out_b + f32_b + (1 << 20)                        # + misc slack


def _tiled_block_bytes(nb, c, ts, itemsize):
    """Padded VMEM bytes for one two-pass grid step (scale pass is the larger of the two)."""
    sub = _sublane(itemsize)
    in_b = 2 * 2 * nb * _rup(c, sub) * ts * itemsize
    out_b = 2 * nb * _rup(2 * c, sub) * ts * itemsize
    f32_b = 2 * nb * _rup(c, 8) * ts * 4 if itemsize < 4 else 0
    return in_b + out_b + f32_b + (1 << 20)


def _pick_fused_batch_block(n, c, s, itemsize, budget):
    """Largest divisor nb of N whose block fits AND keeps >= min(N, 4) grid steps (0 = no fit)."""
    if _fused_block_bytes(1, c, s, itemsize) > budget:
        return 0
    min_steps = min(n, 4)                    # pipelining + v7x megacore need >= 2 (ideally 4+)
    for nb in range(n, 0, -1):
        if n % nb == 0 and n // nb >= min_steps and \
                _fused_block_bytes(nb, c, s, itemsize) <= budget:
            return nb
    return 1


def _pick_two_pass_tiles(n, c, s, itemsize, budget, spatial_tile):
    """Pick (batch block NB, spatial tile TS, n_s). TS is lane-aligned or the full extent."""
    if spatial_tile is not None:
        ts = min(spatial_tile, s)
    else:
        per_lane = max((_tiled_block_bytes(1, c, 128, itemsize) - (1 << 20)) // 128, 1)
        ts = ((budget - (1 << 20)) // per_lane) // 128 * 128
        ts = max(ts, 128)
        if ts >= s:
            ts = s                           # one full-extent spatial tile (no masking needed)
    assert ts == s or ts % 128 == 0, "spatial tile must be a multiple of 128 or the full extent"
    n_s = pl.cdiv(s, ts)

    nb = 1
    min_batch_steps = min(n, 2)              # keep the parallel batch axis shardable (v7x)
    min_total_steps = min(4, n * n_s)        # keep enough steps for double-buffering
    for cand in range(n, 0, -1):
        if n % cand:
            continue
        if _tiled_block_bytes(cand, c, ts, itemsize) > budget:
            continue
        if (n // cand) < min_batch_steps or (n // cand) * n_s < min_total_steps:
            continue
        nb = cand
        break
    return nb, ts, n_s


# ----------------------------------------------------------------------------
# Wrapper
# ----------------------------------------------------------------------------

def se_block_fused(s0, s1, params, *, force_two_pass=False, spatial_tile=None):
    """SEBlock(2C, r, stride=1) applied to concat([s0, s1], channel) without materializing it.

    s0, s1: (N, C, S); returns (N, 2C, S) in the input dtype (pooling/MLP math is f32).
    """
    N, C, S = s0.shape
    C2 = 2 * C
    Hd = params["w1t"].shape[1]
    dt = s0.dtype
    itemsize = jnp.dtype(dt).itemsize

    w1t = params["w1t"].astype(jnp.float32)                    # (2C, H)
    b1 = params["b1"].reshape(1, Hd).astype(jnp.float32)       # (1, H)
    w2 = params["w2"].astype(jnp.float32)                      # (2C, H)
    b2 = params["b2"].reshape(C2, 1).astype(jnp.float32)       # (2C, 1)

    vmem_limit, budget = _vmem_budget()

    nb1 = 0 if force_two_pass else _pick_fused_batch_block(N, C, S, itemsize, budget)

    if nb1 > 0:
        # ------ single fused pass: grid over batch blocks (>= 2 steps -> pipelined) ------
        return pl.pallas_call(
            _se_fused_kernel,
            out_shape=jax.ShapeDtypeStruct((N, C2, S), dt),
            grid_spec=pltpu.PrefetchScalarGridSpec(
                num_scalar_prefetch=0,
                grid=(N // nb1,),
                in_specs=[
                    pl.BlockSpec((nb1, C, S), lambda n: (n, 0, 0)),
                    pl.BlockSpec((nb1, C, S), lambda n: (n, 0, 0)),
                    pl.BlockSpec((C2, Hd), lambda n: (0, 0)),
                    pl.BlockSpec((1, Hd), lambda n: (0, 0)),
                    pl.BlockSpec((C2, Hd), lambda n: (0, 0)),
                    pl.BlockSpec((C2, 1), lambda n: (0, 0)),
                ],
                out_specs=pl.BlockSpec((nb1, C2, S), lambda n: (n, 0, 0)),
            ),
            compiler_params=pltpu.CompilerParams(
                dimension_semantics=("parallel",),
                vmem_limit_bytes=vmem_limit),
        )(s0, s1, w1t, b1, w2, b2)

    # ------ two-pass: S-tiled reduce (-> SE weights) + fully parallel S-tiled scale ------
    nb, ts, n_s = _pick_two_pass_tiles(N, C, S, itemsize, budget, spatial_tile)

    se_w = pl.pallas_call(
        functools.partial(_se_reduce_kernel, true_s=S),
        out_shape=jax.ShapeDtypeStruct((N, C2, 1), jnp.float32),
        grid_spec=pltpu.PrefetchScalarGridSpec(
            num_scalar_prefetch=0,
            grid=(N // nb, n_s),
            in_specs=[
                pl.BlockSpec((nb, C, ts), lambda n, t: (n, 0, t)),
                pl.BlockSpec((nb, C, ts), lambda n, t: (n, 0, t)),
                pl.BlockSpec((C2, Hd), lambda n, t: (0, 0)),
                pl.BlockSpec((1, Hd), lambda n, t: (0, 0)),
                pl.BlockSpec((C2, Hd), lambda n, t: (0, 0)),
                pl.BlockSpec((C2, 1), lambda n, t: (0, 0)),
            ],
            out_specs=pl.BlockSpec((nb, C2, 1), lambda n, t: (n, 0, 0)),
            scratch_shapes=[pltpu.VMEM((nb, C2, 1), jnp.float32)],
        ),
        compiler_params=pltpu.CompilerParams(
            dimension_semantics=("parallel", "arbitrary"),
            vmem_limit_bytes=vmem_limit),
    )(s0, s1, w1t, b1, w2, b2)

    return pl.pallas_call(
        _se_scale_kernel,
        out_shape=jax.ShapeDtypeStruct((N, C2, S), dt),
        grid_spec=pltpu.PrefetchScalarGridSpec(
            num_scalar_prefetch=0,
            grid=(N // nb, n_s),
            in_specs=[
                pl.BlockSpec((nb, C, ts), lambda n, t: (n, 0, t)),
                pl.BlockSpec((nb, C, ts), lambda n, t: (n, 0, t)),
                pl.BlockSpec((nb, C2, 1), lambda n, t: (n, 0, 0)),
            ],
            out_specs=pl.BlockSpec((nb, C2, ts), lambda n, t: (n, 0, t)),
        ),
        compiler_params=pltpu.CompilerParams(
            dimension_semantics=("parallel", "parallel"),
            vmem_limit_bytes=vmem_limit),
    )(s0, s1, se_w)


# ----------------------------------------------------------------------------
# Cell forward + parameters + pure-JAX reference
# ----------------------------------------------------------------------------

def make_cell_params(multiplier, C, r, key):
    """Deterministic parameter init for the SEBlock of Cell (in_ch = C * multiplier)."""
    in_ch = C * multiplier
    hidden = in_ch // r
    assert hidden >= 1
    k1, k2, k3, k4 = jax.random.split(key, 4)
    w1 = jax.random.normal(k1, (hidden, in_ch), jnp.float32) * 0.1   # nn.Linear(in_ch, hidden)
    b1 = jax.random.normal(k2, (hidden,), jnp.float32) * 0.1
    w2 = jax.random.normal(k3, (in_ch, hidden), jnp.float32) * 0.1   # nn.Linear(hidden, in_ch)
    b2 = jax.random.normal(k4, (in_ch,), jnp.float32) * 0.1
    return {"w1t": jnp.asarray(w1.T), "b1": b1, "w2": w2, "b2": b2}


def cell_forward(params, s0, s1, *, force_two_pass=False, spatial_tile=None):
    """Cell.forward with the abstract pieces instantiated minimally.

    s0, s1: (N, C, D, H, W) (PyTorch NCDHW convention); output (N, 2C, D, H, W).
    """
    # TODO(synk): Cell.preprocess0/1 and Cell._ops are abstract in the reference; identity
    # preprocessing + channel-concat combiner are used (the concat is fused into the kernel,
    # never materialized in HBM).  SEBlock has stride=1 so FactorizedReduce is dead code.
    N, C, D, Hh, W = s0.shape
    S = D * Hh * W
    o = se_block_fused(s0.reshape(N, C, S), s1.reshape(N, C, S), params,
                       force_two_pass=force_two_pass, spatial_tile=spatial_tile)
    return o.reshape(N, 2 * C, D, Hh, W)


def cell_forward_ref(params, s0, s1):
    """Pure-JAX reference for the same forward pass (f32)."""
    s = jnp.concatenate([s0, s1], axis=1).astype(jnp.float32)
    N, Cm = s.shape[:2]
    pooled = s.reshape(N, Cm, -1).mean(axis=2)                     # GlobalAvgPool
    h = jnp.maximum(pooled @ params["w1t"] + params["b1"][None, :], 0.0)
    se = jax.nn.sigmoid(h @ params["w2"].T + params["b2"][None, :])
    return s * se[:, :, None, None, None]


if __name__ == "__main__":
    multiplier = 2
    C = 6                   # per-state channels -> SEBlock in_ch = 12, r = 6 -> hidden = 2
    N, D, H, W = 2, 8, 8, 8

    key = jax.random.PRNGKey(0)
    kp, k0, k1 = jax.random.split(key, 3)
    params = make_cell_params(multiplier, C, r=6, key=kp)
    s0 = jax.random.normal(k0, (N, C, D, H, W), jnp.float32)
    s1 = jax.random.normal(k1, (N, C, D, H, W), jnp.float32)

    ref = jax.block_until_ready(cell_forward_ref(params, s0, s1))

    # Path A: single fused pass (batch block chosen so the grid keeps >= 2 pipelined steps).
    out = jax.block_until_ready(cell_forward(params, s0, s1))
    assert out.shape == (N, C * multiplier, D, H, W)
    assert jnp.allclose(out, ref, atol=1e-5, rtol=1e-5), "fused path mismatch vs reference"

    # Path B: two-pass S-tiled reduce + scale (auto-selected for slabs that exceed VMEM;
    # forced here with a 128-lane spatial tile to exercise tiled accumulation).
    out2 = jax.block_until_ready(cell_forward(params, s0, s1,
                                              force_two_pass=True, spatial_tile=128))
    assert jnp.allclose(out2, ref, atol=1e-5, rtol=1e-5), "two-pass path mismatch vs reference"

    # Path C: spatial extent not a multiple of 128 (S = 7*7*4 = 196) exercises the masked
    # partial last tile of the reduce pass and dropped OOB writes of the scale pass.
    Dn, Hn, Wn = 7, 7, 4
    s0n = jax.random.normal(jax.random.PRNGKey(2), (N, C, Dn, Hn, Wn), jnp.float32)
    s1n = jax.random.normal(jax.random.PRNGKey(3), (N, C, Dn, Hn, Wn), jnp.float32)
    refn = jax.block_until_ready(cell_forward_ref(params, s0n, s1n))
    outn1 = jax.block_until_ready(cell_forward(params, s0n, s1n))
    outn2 = jax.block_until_ready(cell_forward(params, s0n, s1n,
                                               force_two_pass=True, spatial_tile=128))
    assert jnp.allclose(outn1, refn, atol=1e-5, rtol=1e-5), "fused path (odd S) mismatch"
    assert jnp.allclose(outn2, refn, atol=1e-5, rtol=1e-5), "two-pass path (odd S) mismatch"

    # bf16 I/O (halves HBM bytes on this bandwidth-bound kernel); pooling/MLP stay f32,
    # the broadcast scale runs in bf16 (v6e/v7x bf16 VALU; widened per-vreg on v5e).
    out_bf = jax.block_until_ready(
        cell_forward(params, s0.astype(jnp.bfloat16), s1.astype(jnp.bfloat16)))
    assert out_bf.dtype == jnp.bfloat16
    assert jnp.allclose(out_bf.astype(jnp.float32), ref, atol=3e-2, rtol=3e-2), \
        "bf16 I/O path mismatch vs reference"

    print("KERNEL_OK")
</pallas_src>

<mosaic_0001>
module attributes {stable_mosaic.version = 11 : i64} {
  func.func @_se_fused_kernel(%arg0: i32, %arg1: memref<1x6x512xf32, #tpu.memory_space<vmem>>, %arg2: memref<1x6x512xf32, #tpu.memory_space<vmem>>, %arg3: memref<12x2xf32, #tpu.memory_space<vmem>>, %arg4: memref<1x2xf32, #tpu.memory_space<vmem>>, %arg5: memref<12x2xf32, #tpu.memory_space<vmem>>, %arg6: memref<12x1xf32, #tpu.memory_space<vmem>>, %arg7: memref<1x12x512xf32, #tpu.memory_space<vmem>>) attributes {dimension_semantics = [#tpu.dimension_semantics<parallel>], iteration_bounds = array<i64: 2>, scalar_prefetch = 0 : i64, scratch_operands = 0 : i64, tpu.core_type = #tpu.core_type<tc>, window_params = [{transform_indices = @transform_0, window_bounds = array<i64: 1, 6, 512>}, {transform_indices = @transform_1, window_bounds = array<i64: 1, 6, 512>}, {pipeline_mode = #tpu.pipeline_mode<synchronous>, transform_indices = @transform_2, window_bounds = array<i64: 12, 2>}, {pipeline_mode = #tpu.pipeline_mode<synchronous>, transform_indices = @transform_3, window_bounds = array<i64: 1, 2>}, {pipeline_mode = #tpu.pipeline_mode<synchronous>, transform_indices = @transform_4, window_bounds = array<i64: 12, 2>}, {pipeline_mode = #tpu.pipeline_mode<synchronous>, transform_indices = @transform_5, window_bounds = array<i64: 12, 1>}, {transform_indices = @transform_6, window_bounds = array<i64: 1, 12, 512>}]} {
    %c0 = arith.constant 0 : index
    %c0_0 = arith.constant 0 : index
    %c0_1 = arith.constant 0 : index
    %0 = vector.load %arg1[%c0, %c0_0, %c0_1] : memref<1x6x512xf32, #tpu.memory_space<vmem>>, vector<1x6x512xf32>
    %cst = arith.constant dense<0.000000e+00> : vector<1x6xf32>
    %1 = vector.multi_reduction <add>, %0, %cst [2] : vector<1x6x512xf32> to vector<1x6xf32>
    %2 = vector.shape_cast %1 : vector<1x6xf32> to vector<1x6x1xf32>
    %cst_2 = arith.constant 0.001953125 : f32
    %3 = vector.broadcast %cst_2 : f32 to vector<1x6x1xf32>
    %4 = arith.mulf %2, %3 : vector<1x6x1xf32>
    %c0_3 = arith.constant 0 : index
    %c0_4 = arith.constant 0 : index
    %c0_5 = arith.constant 0 : index
    %5 = vector.load %arg2[%c0_3, %c0_4, %c0_5] : memref<1x6x512xf32, #tpu.memory_space<vmem>>, vector<1x6x512xf32>
    %cst_6 = arith.constant dense<0.000000e+00> : vector<1x6xf32>
    %6 = vector.multi_reduction <add>, %5, %cst_6 [2] : vector<1x6x512xf32> to vector<1x6xf32>
    %7 = vector.shape_cast %6 : vector<1x6xf32> to vector<1x6x1xf32>
    %cst_7 = arith.constant 0.001953125 : f32
    %8 = vector.broadcast %cst_7 : f32 to vector<1x6x1xf32>
    %9 = arith.mulf %7, %8 : vector<1x6x1xf32>
    %10 = tpu.concatenate %4, %9 in 1 : vector<1x6x1xf32>, vector<1x6x1xf32> -> vector<1x12x1xf32>
    %c0_8 = arith.constant 0 : index
    %c0_9 = arith.constant 0 : index
    %11 = vector.load %arg3[%c0_8, %c0_9] : memref<12x2xf32, #tpu.memory_space<vmem>>, vector<12x2xf32>
    %12 = vector.shape_cast %11 : vector<12x2xf32> to vector<1x12x2xf32>
    %13 = vector.broadcast %10 : vector<1x12x1xf32> to vector<1x12x2xf32>
    %14 = arith.mulf %12, %13 : vector<1x12x2xf32>
    %cst_10 = arith.constant dense<0.000000e+00> : vector<1x2xf32>
    %15 = vector.multi_reduction <add>, %14, %cst_10 [1] : vector<1x12x2xf32> to vector<1x2xf32>
    %16 = vector.shape_cast %15 : vector<1x2xf32> to vector<1x1x2xf32>
    %c0_11 = arith.constant 0 : index
    %c0_12 = arith.constant 0 : index
    %17 = vector.load %arg4[%c0_11, %c0_12] : memref<1x2xf32, #tpu.memory_space<vmem>>, vector<1x2xf32>
    %18 = vector.shape_cast %17 : vector<1x2xf32> to vector<1x1x2xf32>
    %19 = arith.addf %16, %18 : vector<1x1x2xf32>
    %cst_13 = arith.constant 0.000000e+00 : f32
    %20 = vector.broadcast %cst_13 : f32 to vector<1x1x2xf32>
    %21 = arith.maximumf %19, %20 : vector<1x1x2xf32>
    %c0_14 = arith.constant 0 : index
    %c0_15 = arith.constant 0 : index
    %22 = vector.load %arg5[%c0_14, %c0_15] : memref<12x2xf32, #tpu.memory_space<vmem>>, vector<12x2xf32>
    %23 = vector.shape_cast %22 : vector<12x2xf32> to vector<1x12x2xf32>
    %24 = vector.broadcast %21 : vector<1x1x2xf32> to vector<1x12x2xf32>
    %25 = arith.mulf %23, %24 : vector<1x12x2xf32>
    %cst_16 = arith.constant dense<0.000000e+00> : vector<1x12xf32>
    %26 = vector.multi_reduction <add>, %25, %cst_16 [2] : vector<1x12x2xf32> to vector<1x12xf32>
    %27 = vector.shape_cast %26 : vector<1x12xf32> to vector<1x12x1xf32>
    %c0_17 = arith.constant 0 : index
    %c0_18 = arith.constant 0 : index
    %28 = vector.load %arg6[%c0_17, %c0_18] : memref<12x1xf32, #tpu.memory_space<vmem>>, vector<12x1xf32>
    %29 = vector.shape_cast %28 : vector<12x1xf32> to vector<1x12x1xf32>
    %30 = arith.addf %27, %29 : vector<1x12x1xf32>
    %31 = arith.negf %30 : vector<1x12x1xf32>
    %32 = math.exp %31 : vector<1x12x1xf32>
    %cst_19 = arith.constant 1.000000e+00 : f32
    %33 = vector.broadcast %cst_19 : f32 to vector<1x12x1xf32>
    %34 = arith.addf %33, %32 : vector<1x12x1xf32>
    %35 = arith.divf %33, %34 : vector<1x12x1xf32>
    %c0_20 = arith.constant 0 : index
    %c0_21 = arith.constant 0 : index
    %c0_22 = arith.constant 0 : index
    %36 = vector.load %arg1[%c0_20, %c0_21, %c0_22] : memref<1x6x512xf32, #tpu.memory_space<vmem>>, vector<1x6x512xf32>
    %37 = vector.extract_strided_slice %35 {offsets = [0, 0, 0], sizes = [1, 6, 1], strides = [1, 1, 1]} : vector<1x12x1xf32> to vector<1x6x1xf32>
    %38 = vector.broadcast %37 : vector<1x6x1xf32> to vector<1x6x512xf32>
    %39 = arith.mulf %36, %38 : vector<1x6x512xf32>
    %c0_23 = arith.constant 0 : index
    %c0_24 = arith.constant 0 : index
    %c0_25 = arith.constant 0 : index
    %40 = vector.load %arg7[%c0_23, %c0_24, %c0_25] : memref<1x12x512xf32, #tpu.memory_space<vmem>>, vector<1x6x512xf32>
    tpu.vector_store %arg7[%c0_23, %c0_24, %c0_25], %39 {strides = array<i32>} : memref<1x12x512xf32, #tpu.memory_space<vmem>>, vector<1x6x512xf32>,
    %c0_26 = arith.constant 0 : index
    %c0_27 = arith.constant 0 : index
    %c0_28 = arith.constant 0 : index
    %41 = vector.load %arg2[%c0_26, %c0_27, %c0_28] : memref<1x6x512xf32, #tpu.memory_space<vmem>>, vector<1x6x512xf32>
    %42 = vector.extract_strided_slice %35 {offsets = [0, 6, 0], sizes = [1, 6, 1], strides = [1, 1, 1]} : vector<1x12x1xf32> to vector<1x6x1xf32>
    %43 = vector.broadcast %42 : vector<1x6x1xf32> to vector<1x6x512xf32>
    %44 = arith.mulf %41, %43 : vector<1x6x512xf32>
    %c0_29 = arith.constant 0 : index
    %c6 = arith.constant 6 : index
    %c0_30 = arith.constant 0 : index
    %45 = vector.load %arg7[%c0_29, %c6, %c0_30] : memref<1x12x512xf32, #tpu.memory_space<vmem>>, vector<1x6x512xf32>
    tpu.vector_store %arg7[%c0_29, %c6, %c0_30], %44 {strides = array<i32>} : memref<1x12x512xf32, #tpu.memory_space<vmem>>, vector<1x6x512xf32>,
    return
  }
  func.func @transform_0(%arg0: i32) -> (i32, i32, i32) {
    %c0_i32 = arith.constant 0 : i32
    %c0_i32_0 = arith.constant 0 : i32
    %c0_i32_1 = arith.constant 0 : i32
    return %arg0, %c0_i32, %c0_i32_0 : i32, i32, i32
  }
  func.func @transform_1(%arg0: i32) -> (i32, i32, i32) {
    %c0_i32 = arith.constant 0 : i32
    %c0_i32_0 = arith.constant 0 : i32
    %c0_i32_1 = arith.constant 0 : i32
    return %arg0, %c0_i32, %c0_i32_0 : i32, i32, i32
  }
  func.func @transform_2(%arg0: i32) -> (i32, i32) {
    %c0_i32 = arith.constant 0 : i32
    %c0_i32_0 = arith.constant 0 : i32
    %c0_i32_1 = arith.constant 0 : i32
    return %c0_i32, %c0_i32_0 : i32, i32
  }
  func.func @transform_3(%arg0: i32) -> (i32, i32) {
    %c0_i32 = arith.constant 0 : i32
    %c0_i32_0 = arith.constant 0 : i32
    %c0_i32_1 = arith.constant 0 : i32
    return %c0_i32, %c0_i32_0 : i32, i32
  }
  func.func @transform_4(%arg0: i32) -> (i32, i32) {
    %c0_i32 = arith.constant 0 : i32
    %c0_i32_0 = arith.constant 0 : i32
    %c0_i32_1 = arith.constant 0 : i32
    return %c0_i32, %c0_i32_0 : i32, i32
  }
  func.func @transform_5(%arg0: i32) -> (i32, i32) {
    %c0_i32 = arith.constant 0 : i32
    %c0_i32_0 = arith.constant 0 : i32
    %c0_i32_1 = arith.constant 0 : i32
    return %c0_i32, %c0_i32_0 : i32, i32
  }
  func.func @transform_6(%arg0: i32) -> (i32, i32, i32) {
    %c0_i32 = arith.constant 0 : i32
    %c0_i32_0 = arith.constant 0 : i32
    %c0_i32_1 = arith.constant 0 : i32
    return %arg0, %c0_i32, %c0_i32_0 : i32, i32, i32
  }
}

</mosaic_0001>

<bundles_post_ra>
// kernel: tpu_custom_call.1
= control target key start
LH: loop header
LB: loop body
LE: loop exit
PB: predicated region body
PF: predicated region fallthrough
CT: control target
= control target key end

     0   :  { %s560_s21 = smov 0   ;;  %s644_s0 = inlined_call_operand.vmem [shape: f32[2,6,512], index: 0, kind: input, shape index: {}]   ;;  %s645_s1 = inlined_call_operand.vmem [shape: f32[2,6,512], index: 1, kind: input, shape index: {}]   ;;  %s646_s2 = inlined_call_operand.vmem [shape: f32[12,2], index: 2, kind: input, shape index: {}]   ;;  %s647_s3 = inlined_call_operand.vmem [shape: f32[1,2], index: 3, kind: input, shape index: {}]   ;;  %s648_s4 = inlined_call_operand.vmem [shape: f32[12,2], index: 4, kind: input, shape index: {}]   ;;  %s649_s5 = inlined_call_operand.vmem [shape: f32[12,1], index: 5, kind: input, shape index: {}]   ;;  %s650_s6 = inlined_call_operand.vmem [shape: f32[2,12,512], index: 6, kind: output, shape index: {}]  }
   0x1 LB: > { %s479_s22 = sadd.s32 4294967295, %s522_s21   ;;  %p483_p0 = scmp.ge.s32.totalorder %s522_s21, 1  ;;  %s522_s21 = sphi %s560_s21, %s16_s21  }
   0x2   : > { %p222_p1 = scmp.lt.s32.totalorder %s522_s21, 3 }
   0x4   : > { %p223_p2 = pnand %p483_p0, %p222_p1 }
   0x5   : > { %p257_p3 = scmp.lt.s32.totalorder (!%p223_p2), %s479_s22, 1  ;;  %vm276_vm0 = vcmask (!%p223_p2), 1045504   ;;  %v524_v22 = vmov (!%p223_p2), 0   ;;  %v305_v29 = vld [vmem:[%s646_s2] sm:$0xff] (!%p223_p2)  ;;  %v306_v31 = vld [vmem:[%s646_s2 + $0x8] sm:$0xf] (!%p223_p2)  ;;  %v334_v41 = vlaneseq (!%p223_p2) }
   0x6   : > { %226 = sbr.rel (%p223_p2) target bundleno = 640 (0x280), region = 44  ;;  %506 = vset.pattern.permute.xlu1 (!%p223_p2), %v524_v22  ;;  %507 = vset.pattern.permute.xlu0 (!%p223_p2), %v524_v22  ;;  %vm318_vm1 = vcmask (!%p223_p2), 15360   ;;  %vm320_vm2 = vcmask (!%p223_p2), 11264   ;;  %v329_v45 = vld [vmem:[%s647_s3] sm:$0x1] (!%p223_p2)  ;;  %vm383_vm3 = vcmask (!%p223_p2), 1041408  }
   0x7   : > { %v335_v44 = vshrl.u32 (!%p223_p2), %v334_v41, 7  ;;  %v333_v50 = vld [vmem:[%s648_s4 + $0x8] sm:$0xf] (!%p223_p2)  ;;  %v332_v51 = vld [vmem:[%s648_s4] sm:$0xff] (!%p223_p2) }
   0x8   : > { %v347_v57 = vld [vmem:[%s649_s5 + $0x8] sm:$0xf] (!%p223_p2)  ;;  %v346_v58 = vld [vmem:[%s649_s5] sm:$0xff] (!%p223_p2) }
   0x9   : > { %v336_v48 = vsub.s32 (!%p223_p2), 0, %v335_v44 }
   0xd   : > { %s652_s22 = smov (!%p257_p3, %s479_s22), 1 }
   0xe   : > { %s494_s23 = sshll.u32 %s652_s22, 5  ;;  %s496_s20 = sshll.u32 %s652_s22, 6 }
   0xf   : > { %s574_s26 = scalar_lea.vmem %s645_s1, %s494_s23  ;;  %s261_s29 = scalar_lea.vmem %s644_s0, %s494_s23 }
  0x10   : > { %v287_v0 = vld [vmem:[%s574_s26] sm:$0x3f]  ;;  %v288_v1 = vld [vmem:[%s574_s26 + $0x8] sm:$0x3f]  ;;  %v289_v2 = vld [vmem:[%s574_s26 + $0x10] sm:$0x3f]  ;;  %s271_s25 = scalar_lea.vmem %s650_s6, %s496_s20 }
  0x11   : > { %v290_v3 = vld [vmem:[%s574_s26 + $0x18] sm:$0x3f]  ;;  %v291_v4 = vsel %vm276_vm0, %v287_v0, 0.0  ;;  %v292_v5 = vsel %vm276_vm0, %v288_v1, 0.0  ;;  %v294_v6 = vsel %vm276_vm0, %v289_v2, 0.0 }
  0x12   : > { %v293_v7 = vadd.f32 %v292_v5, %v291_v4  ;;  %v296_v8 = vsel %vm276_vm0, %v290_v3, 0.0  ;;  %v587_v9 = vld [vmem:[%s261_s29] sm:$0x3f]  ;;  %v589_v10 = vld [vmem:[%s261_s29 + $0x8] sm:$0x3f] }
  0x13   : > { %v591_v11 = vld [vmem:[%s261_s29 + $0x10] sm:$0x3f]  ;;  %v593_v12 = vld [vmem:[%s261_s29 + $0x18] sm:$0x3f]  ;;  %v277_v13 = vsel %vm276_vm0, %v587_v9, 0.0  ;;  %v278_v14 = vsel %vm276_vm0, %v589_v10, 0.0 }
  0x14   : > { %v295_v15 = vadd.f32 %v294_v6, %v293_v7  ;;  %v279_v16 = vadd.f32 %v278_v14, %v277_v13  ;;  %v280_v17 = vsel %vm276_vm0, %v591_v11, 0.0  ;;  %v282_v18 = vsel %vm276_vm0, %v593_v12, 0.0  ;;  %v375_v14 = vld [vmem:[%s574_s26] sm:$0x3f] }
  0x16   : > { %v297_v19 = vadd.f32 %v296_v8, %v295_v15  ;;  %v281_v20 = vadd.f32 %v280_v17, %v279_v16  ;;  %v376_v15 = vld [vmem:[%s574_s26 + $0x8] sm:$0x3f] }
  0x18   : > { %298 = vadd.xlane.f32.xlu0 %v297_v19  ;;  %v283_v21 = vadd.f32 %v282_v18, %v281_v20  ;;  %v377_v20 = vld [vmem:[%s574_s26 + $0x10] sm:$0x3f] }
  0x1c   : > { %284 = vadd.xlane.f32.xlu0 %v283_v21  ;;  %v378_v21 = vld [vmem:[%s574_s26 + $0x18] sm:$0x3f] }
  0xa5   : > { %v299_v23 = vpop.xlane.xlu0 %298 }
  0xa6   : > { %v300_v24 = vmul.f32 0.001953125, %v299_v23 }
  0xa8   : > { %v302_v26 = vrot.slane %v300_v24, 2 }
  0xa9   : > { %v285_v25 = vpop.xlane.xlu0 %284 }
  0xaa   : > { %v286_v27 = vmul.f32 0.001953125, %v285_v25 }
  0xac   : > { %v304_v28 = vsel %vm276_vm0, %v286_v27, %v302_v26 }
  0xad   : > { %309 = vperm.xlu1 %506, %v304_v28  }
  0xb1   : > { %313 = vperm.xlu1 %506, %v302_v26  }
 0x12c   : > { %v310_v30 = vpop.permute.xlu1 %309 }
 0x12d   : > { %v316_v32 = vmul.f32 %v310_v30, %v305_v29 }
 0x12f   : > { %v319_v35 = vsel %vm318_vm1, %v316_v32, 0.0 }
 0x130   : > { %v314_v33 = vpop.permute.xlu1 %313 }
 0x131   : > { %v317_v34 = vmul.f32 %v314_v33, %v306_v31 }
 0x133   : > { %v321_v36 = vsel %vm320_vm2, %v317_v34, 0.0 }
 0x134   : > { %v322_v37 = vadd.f32 %v321_v36, %v319_v35 }
 0x136   : > { %v323_v38 = vrot.slane %v322_v37, 4 }
 0x138   : > { %v324_v39 = vadd.f32 %v323_v38, %v322_v37 }
 0x13a   : > { %v325_v40 = vrot.slane %v324_v39, 2 }
 0x13c   : > { %v326_v42 = vadd.f32 %v325_v40, %v324_v39 }
 0x13e   : > { %v327_v43 = vrot.slane %v326_v42, 1 }
 0x140   : > { %v328_v46 = vadd.f32 %v327_v43, %v326_v42 }
 0x142   : > { %v330_v47 = vadd.f32 %v329_v45, %v328_v46 }
 0x144   : > { %v331_v49 = vmax.f32 %v330_v47, 0.0 }
 0x146   : > { %v337_v52 = vrot.slane %v331_v49, %v336_v48 }
 0x148   : > { %v339_v53 = vmul.f32 %v337_v52, %v333_v50  ;;  %v338_v54 = vmul.f32 %v337_v52, %v332_v51 }
 0x14a   : > { %v343_v55 = vsel %vm320_vm2, %v339_v53, 0.0  ;;  %v340_v56 = vsel %vm318_vm1, %v338_v54, 0.0 }
 0x14b   : > { %344 = vadd.xlane.f32.xlu1 %v343_v55  ;;  %341 = vadd.xlane.f32.xlu0 %v340_v56 }
 0x1d8   : > { %v345_v59 = vpop.xlane.xlu1 %344  ;;  %v342_v60 = vpop.xlane.xlu0 %341 }
 0x1d9   : > { %v349_v61 = vadd.f32 %v347_v57, %v345_v59  ;;  %v348_v62 = vadd.f32 %v346_v58, %v342_v60 }
 0x1db   : > { %v491_v63 = vmul.f32 -1.442695, %v349_v61  ;;  %v490_v0 = vmul.f32 -1.442695, %v348_v62 }
 0x1dd   : > { %508 = vpow2.f32 %v491_v63 }
 0x1de   : > { %510 = vpow2.f32 %v490_v0 }
 0x1e7   : > { %v509_v1 = vpop.eup %508 }
 0x1e8   : > { %v511_v2 = vpop.eup %510  ;;  %v357_v3 = vadd.f32 1.0, %v509_v1 }
 0x1e9   : > { %v356_v4 = vadd.f32 1.0, %v511_v2 }
 0x1ea   : > { %512 = vrcp.f32 %v357_v3 }
 0x1eb   : > { %514 = vrcp.f32 %v356_v4 }
 0x1f4   : > { %v513_v5 = vpop.eup %512 }
 0x1f5   : > { %v515_v6 = vpop.eup %514  ;;  %381 = vperm.xlu1 %506, %v513_v5  }
 0x1f6   : > { %364 = vperm.xlu0 %507, %v515_v6  }
 0x274   : > { %v382_v7 = vpop.permute.xlu1 %381 }
 0x275   : > { %v385_v8 = vrot.slane %v382_v7, 6  ;;  %v365_v13 = vpop.permute.xlu0 %364 }
 0x276   : > { %v367_v16 = vmul.f32 %v365_v13, %v587_v9  ;;  %v368_v17 = vmul.f32 %v365_v13, %v589_v10  ;;  %v369_v18 = vmul.f32 %v365_v13, %v591_v11  ;;  %v370_v19 = vmul.f32 %v365_v13, %v593_v12 }
 0x277   : > { %v384_v22 = vrot.slane %v365_v13, 6 }
 0x278   : > { %371 = vst [vmem:[%s271_s25] sm:$0x3f] %v367_v16  ;;  %372 = vst [vmem:[%s271_s25 + $0x8] sm:$0x3f] %v368_v17 }
 0x279   : > { %373 = vst [vmem:[%s271_s25 + $0x10] sm:$0x3f] %v369_v18  ;;  %374 = vst [vmem:[%s271_s25 + $0x18] sm:$0x3f] %v370_v19  ;;  %v386_v23 = vsel %vm383_vm3, %v384_v22, %v385_v8 }
 0x27a   : > { %v388_v24 = vmul.f32 %v386_v23, %v375_v14  ;;  %v389_v25 = vmul.f32 %v386_v23, %v376_v15  ;;  %v390_v26 = vmul.f32 %v386_v23, %v377_v20  ;;  %v391_v27 = vmul.f32 %v386_v23, %v378_v21 }
 0x27c   : > { %v396_v28 = vrot.slane %v388_v24, 2  ;;  %v397_v9 = vrot.slane %v389_v25, 2  ;;  %v398_v29 = vrot.slane %v390_v26, 2  ;;  %v399_v10 = vrot.slane %v391_v27, 2 }
 0x27e   : > { %404 = vst [vmem:[%s271_s25 + $0x20] ss:$-28 sps:$4 sm:$0xcf] %v396_v28   ;;  %405 = vst [vmem:[%s271_s25 + $0x28] ss:$-28 sps:$4 sm:$0xcf] %v397_v9  }
 0x27f   : > { %406 = vst [vmem:[%s271_s25 + $0x30] ss:$-28 sps:$4 sm:$0xcf] %v398_v29   ;;  %407 = vst [vmem:[%s271_s25 + $0x38] ss:$-28 sps:$4 sm:$0xcf] %v399_v10  }
 0x280 PF: > { %s16_s21 = sadd.s32 1, %s522_s21  }
 0x281   : > { %p13_p4 = scmp.ge.s32.totalorder %s16_s21, 4  }
 0x283   :  { %15 = sbr.rel (!%p13_p4) target bundleno = 1 (0x1), region = 77 }

</bundles_post_ra>
